<compile_context>
chip_gen: v6e
topology: v6e:2x2x1
jax: 0.10.0
libtpu: 0.0.40
codegen_flags: <defaults>
</compile_context>

<pallas_src>
import functools

import jax
import jax.numpy as jnp
from jax.experimental import pallas as pl
from jax.experimental.pallas import tpu as pltpu


def _sine_learnable_kernel(scale_ref, x_ref, o_ref, *, w0):
    # scale_ref: (1, 1) f32 in SMEM  -> learnable scalar s
    # x_ref, o_ref: (rt, 128) tiles in VMEM
    s = scale_ref[0, 0]
    x = x_ref[...].astype(jnp.float32)          # f32 internal math (phase precision)
    y = s * jnp.sin(jnp.float32(w0) * x)
    o_ref[...] = y.astype(o_ref.dtype)


def _cdiv(a, b):
    return -(-a // b)


def _round_up(a, b):
    return _cdiv(a, b) * b


@functools.partial(jax.jit, static_argnames=("w0", "lane", "row_tile"))
def sine_learnable(x, scale_param, *, w0=1.0, lane=128, row_tile=4096):
    """Apply s * sin(w0 * x) elementwise. x: any shape/size, scale_param: scalar."""
    orig_shape = x.shape
    orig_dtype = x.dtype
    n = x.size

    # Lane-dense slab: (rows, 128). Pick a row tile that
    #   (a) is a multiple of 8 (sublane constraint),
    #   (b) gives ~MiB-scale blocks (row_tile rows),
    #   (c) yields >= 2 grid steps when there is enough work (v7x: 2 TCs).
    rows = max(1, _cdiv(n, lane))
    num_steps = _cdiv(rows, row_tile)
    if num_steps < 2 and rows > 8:
        num_steps = 2
    rt = _round_up(_cdiv(rows, num_steps), 8)
    grid_steps = _cdiv(rows, rt)
    rows_padded = grid_steps * rt

    x_flat = x.reshape(-1)
    pad = rows_padded * lane - n
    if pad:
        x_flat = jnp.pad(x_flat, (0, pad))
    x2d = x_flat.reshape(rows_padded, lane)

    scale2d = jnp.asarray(scale_param, jnp.float32).reshape(1, 1)

    # Input + output, each double-buffered, must fit scoped VMEM (v5e default
    # is only 16 MiB); size the limit from the tile, floor at 32 MiB.
    itemsize = jnp.dtype(orig_dtype).itemsize
    tile_bytes = rt * lane * itemsize
    vmem_limit = int(min(max(4 * tile_bytes + (2 << 20), 32 << 20), 48 << 20))

    out = pl.pallas_call(
        functools.partial(_sine_learnable_kernel, w0=float(w0)),
        out_shape=jax.ShapeDtypeStruct((rows_padded, lane), orig_dtype),
        grid=(grid_steps,),
        in_specs=[
            pl.BlockSpec(memory_space=pltpu.MemorySpace.SMEM),   # scale scalar
            pl.BlockSpec((rt, lane), lambda i: (i, 0)),          # x tile
        ],
        out_specs=pl.BlockSpec((rt, lane), lambda i: (i, 0)),
        compiler_params=pltpu.CompilerParams(
            dimension_semantics=("parallel",),
            vmem_limit_bytes=vmem_limit,
        ),
    )(scale2d, x2d)

    out_flat = out.reshape(-1)
    if pad:
        out_flat = out_flat[:n]
    return out_flat.reshape(orig_shape)


if __name__ == "__main__":
    key = jax.random.PRNGKey(0)

    # Module hyperparameters (deterministic, in-script).
    w0 = 30.0           # SIREN-style setting
    scale_init = 2.0    # learnable scalar 's'
    learnable = True    # SineLearnable(w0, scale, learnable=True)

    scale_param = jnp.float32(scale_init) if learnable else jnp.float32(1.0)

    # NCHW input, like the PyTorch module would receive.
    x = jax.random.normal(key, (2, 4, 16, 16), dtype=jnp.float32)
    y = jax.block_until_ready(sine_learnable(x, scale_param, w0=w0))
    y_ref = scale_param * jnp.sin(w0 * x)
    assert y.shape == x.shape and y.dtype == x.dtype
    assert jnp.allclose(y, y_ref, atol=1e-5, rtol=1e-5)

    # Shape whose numel is not a multiple of 128 (exercises the padding path).
    x2 = jax.random.normal(jax.random.PRNGKey(1), (3, 5, 7, 11), dtype=jnp.float32)
    y2 = jax.block_until_ready(sine_learnable(x2, scale_param, w0=w0))
    y2_ref = scale_param * jnp.sin(w0 * x2)
    assert jnp.allclose(y2, y2_ref, atol=1e-5, rtol=1e-5)

    # bf16 I/O with f32 internal math.
    x3 = jax.random.normal(jax.random.PRNGKey(2), (2, 4, 16, 16), dtype=jnp.bfloat16)
    y3 = jax.block_until_ready(sine_learnable(x3, scale_param, w0=w0))
    y3_ref = (scale_param * jnp.sin(w0 * x3.astype(jnp.float32))).astype(jnp.bfloat16)
    assert y3.shape == x3.shape and y3.dtype == jnp.bfloat16
    assert jnp.allclose(y3.astype(jnp.float32), y3_ref.astype(jnp.float32),
                        atol=2e-2, rtol=2e-2)

    print("KERNEL_OK")
</pallas_src>

<mosaic_0001>
module attributes {stable_mosaic.version = 11 : i64} {
  func.func @_sine_learnable_kernel(%arg0: i32, %arg1: memref<1x1xf32, #tpu.memory_space<smem>>, %arg2: memref<8x128xf32, #tpu.memory_space<vmem>>, %arg3: memref<8x128xf32, #tpu.memory_space<vmem>>) attributes {dimension_semantics = [#tpu.dimension_semantics<parallel>], iteration_bounds = array<i64: 2>, scalar_prefetch = 0 : i64, scratch_operands = 0 : i64, tpu.core_type = #tpu.core_type<tc>, window_params = [{transform_indices = @transform_0, window_bounds = array<i64: 1, 1>}, {transform_indices = @transform_1, window_bounds = array<i64: 8, 128>}, {transform_indices = @transform_2, window_bounds = array<i64: 8, 128>}]} {
    %c0 = arith.constant 0 : index
    %c0_0 = arith.constant 0 : index
    %0 = memref.load %arg1[%c0, %c0_0] : memref<1x1xf32, #tpu.memory_space<smem>>
    %c0_1 = arith.constant 0 : index
    %c0_2 = arith.constant 0 : index
    %1 = vector.load %arg2[%c0_1, %c0_2] : memref<8x128xf32, #tpu.memory_space<vmem>>, vector<8x128xf32>
    %cst = arith.constant 3.000000e+01 : f32
    %2 = vector.broadcast %cst : f32 to vector<8x128xf32>
    %3 = arith.mulf %2, %1 : vector<8x128xf32>
    %4 = math.sin %3 : vector<8x128xf32>
    %5 = vector.broadcast %0 : f32 to vector<8x128xf32>
    %6 = arith.mulf %5, %4 : vector<8x128xf32>
    %c0_3 = arith.constant 0 : index
    %c0_4 = arith.constant 0 : index
    %7 = vector.load %arg3[%c0_3, %c0_4] : memref<8x128xf32, #tpu.memory_space<vmem>>, vector<8x128xf32>
    tpu.vector_store %arg3[%c0_3, %c0_4], %6 {strides = array<i32>} : memref<8x128xf32, #tpu.memory_space<vmem>>, vector<8x128xf32>,
    return
  }
  func.func @transform_0(%arg0: i32) -> (i32, i32) {
    %c0_i32 = arith.constant 0 : i32
    %c0_i32_0 = arith.constant 0 : i32
    %c0_i32_1 = arith.constant 0 : i32
    return %c0_i32, %c0_i32_0 : i32, i32
  }
  func.func @transform_1(%arg0: i32) -> (i32, i32) {
    %c0_i32 = arith.constant 0 : i32
    %c0_i32_0 = arith.constant 0 : i32
    return %arg0, %c0_i32 : i32, i32
  }
  func.func @transform_2(%arg0: i32) -> (i32, i32) {
    %c0_i32 = arith.constant 0 : i32
    %c0_i32_0 = arith.constant 0 : i32
    return %arg0, %c0_i32 : i32, i32
  }
}

</mosaic_0001>

<bundles_post_ra>
// kernel: sine_learnable.1
= control target key start
LH: loop header
LB: loop body
LE: loop exit
PB: predicated region body
PF: predicated region fallthrough
CT: control target
= control target key end

     0   :  { %s370_s11 = smov 0   ;;  %s415_s0 = inlined_call_operand.<no memory space> [shape: f32[1,1], index: 0, kind: input, shape index: {}]   ;;  %s416_s1 = inlined_call_operand.vmem [shape: f32[16,128], index: 1, kind: input, shape index: {}]   ;;  %s417_s2 = inlined_call_operand.vmem [shape: f32[16,128], index: 2, kind: output, shape index: {}]  }
   0x1   :  { %7 = sst [smem:[#allocation2]] %s415_s0 }
   0x2 LB: > { %s303_s12 = sadd.s32 4294967295, %s344_s11   ;;  %p307_p0 = scmp.ge.s32.totalorder %s344_s11, 1  ;;  %s344_s11 = sphi %s370_s11, %s13_s11  }
   0x3   : > { %p112_p1 = scmp.lt.s32.totalorder %s344_s11, 3 }
   0x5   : > { %p113_p2 = pnand %p307_p0, %p112_p1 }
   0x6   : > { %p132_p3 = scmp.lt.s32.totalorder (!%p113_p2), %s303_s12, 1  ;;  %s140_s16 = sld [smem:[#allocation2]] (!%p113_p2) }
   0x7   : > { %116 = sbr.rel (%p113_p2) target bundleno = 104 (0x68), region = 28 }
   0xc   : > { %s419_s12 = smov (!%p132_p3, %s303_s12), 1  ;;  %v346_v13 = vmov 683565275   ;;  %v347_v15 = vmov 2475754826  }
   0xd   : > { %s308_s0 = sshll.u32 %s419_s12, 3  ;;  %v348_v17 = vmov 2131351028   ;;  %v349_v19 = vmov 2102212464  }
   0xe   : > { %s135_s15 = scalar_lea.vmem %s416_s1, %s308_s0  ;;  %v350_v21 = vmov 920167782   ;;  %v351_v28 = vmov 1326507024   ;;  %s139_s19 = scalar_lea.vmem %s417_s2, %s308_s0 }
   0xf   : > { %v141_v0 = vld [vmem:[%s135_s15] sm:$0xff] }
  0x10   : > { %v386_v1 = vmul.f32 30.0, %v141_v0 }
  0x12   : > { %v146_v2 = vand.u32 2139095040, %v386_v1  ;;  %v143_v4 = vand.u32 2147483647, %v386_v1  ;;  %vm145_vm7 = vcmp.lt.s32.totalorder %v386_v1, 0  ;;  %vm235_vm12 = vweird.f32 %v386_v1 }
  0x14   : > { %v147_v3 = vshrl.u32 %v146_v2, 23  ;;  %v150_v7 = vand.u32 8388607, %v143_v4  ;;  %vm144_vm8 = vcmp.le.f32.partialorder %v143_v4, 0.7853982 }
  0x16   : > { %v310_v5 = vadd.s32 4294967169, %v147_v3  ;;  %v151_v10 = vor.u32 8388608, %v150_v7 }
  0x18   : > { %v153_v6 = vadd.s32 1, %v310_v5  ;;  %v191_v30 = vshll.u32 %v151_v10, 8 }
  0x1a   : > { %vm154_vm0 = vcmp.gt.s32.totalorder %v153_v6, 0 }
  0x1b   : > { %v155_v8 = vsel %vm154_vm0, %v153_v6, 0 }
  0x1c   : > { %v157_v9 = vand.u32 31, %v155_v8  ;;  %v156_v11 = vshrl.u32 %v155_v8, 5 }
  0x1e   : > { %v158_v12 = vsub.s32 32, %v157_v9  ;;  %v160_v14 = vshll.u32 %v346_v13, %v157_v9  ;;  %v163_v16 = vshll.u32 %v347_v15, %v157_v9  ;;  %v166_v18 = vshll.u32 %v348_v17, %v157_v9 }
  0x1f   : > { %v169_v20 = vshll.u32 %v349_v19, %v157_v9  ;;  %v172_v22 = vshll.u32 %v350_v21, %v157_v9  ;;  %vm175_vm1 = vcmp.lt.s32.totalorder %v156_v11, 1  ;;  %vm178_vm2 = vcmp.lt.s32.totalorder %v156_v11, 4 }
  0x20   : > { %v159_v23 = vshrl.u32 %v346_v13, %v158_v12  ;;  %v161_v24 = vshrl.u32 %v347_v15, %v158_v12  ;;  %v164_v25 = vshrl.u32 %v348_v17, %v158_v12  ;;  %v167_v26 = vshrl.u32 %v349_v19, %v158_v12 }
  0x21   : > { %v170_v27 = vshrl.u32 %v350_v21, %v158_v12  ;;  %v173_v29 = vshrl.u32 %v351_v28, %v158_v12  ;;  %vm176_vm3 = vcmp.lt.s32.totalorder %v156_v11, 2  ;;  %vm177_vm4 = vcmp.lt.s32.totalorder %v156_v11, 3 }
  0x22   : > { %v162_v31 = vor.u32 %v161_v24, %v160_v14  ;;  %v165_v32 = vor.u32 %v164_v25, %v163_v16  ;;  %v168_v33 = vor.u32 %v167_v26, %v166_v18  ;;  %v247_v28 = vstv %s140_s16 }
  0x23   : > { %v171_v34 = vor.u32 %v170_v27, %v169_v20  ;;  %v174_v35 = vor.u32 %v173_v29, %v172_v22 }
  0x24   : > { %v179_v36 = vsel %vm175_vm1, %v159_v23, %v162_v31  ;;  %v180_v37 = vsel %vm178_vm2, %v168_v33, 2102212464  ;;  %v183_v38 = vsel %vm175_vm1, %v162_v31, %v165_v32  ;;  %v187_v39 = vsel %vm175_vm1, %v165_v32, %v168_v33 }
  0x25   : > { %v181_v40 = vsel %vm177_vm4, %v165_v32, %v180_v37  ;;  %v184_v41 = vsel %vm178_vm2, %v171_v34, 920167782  ;;  %v188_v42 = vsel %vm178_vm2, %v174_v35, 1326507024 }
  0x26   : > { %v185_v43 = vsel %vm177_vm4, %v168_v33, %v184_v41  ;;  %v189_v44 = vsel %vm177_vm4, %v171_v34, %v188_v42  ;;  %v182_v45 = vsel %vm176_vm3, %v179_v36, %v181_v40 }
  0x27   : > { %v186_v46 = vsel %vm176_vm3, %v183_v38, %v185_v43  ;;  %v190_v47 = vsel %vm176_vm3, %v187_v39, %v189_v44  ;;  %v198_v52 = vmul.u32 %v191_v30, %v182_v45 }
  0x28   : > { %v392_v48 = vmul.u32.u64.low %v191_v30, %v190_v47  ;;  %v393_v49 = vmul.u32.u64.high %v191_v30, %v190_v47, %v392_v48  ;;  %v395_v50 = vmul.u32.u64.low %v191_v30, %v186_v46  ;;  %v396_v51 = vmul.u32.u64.high %v191_v30, %v186_v46, %v395_v50 }
  0x2a   : > { %vm200_vm5 = vc.u32 %v393_v49, %v395_v50  ;;  %v201_v53 = vadd.s32 1, %v396_v51  ;;  %v199_v0 = vadd.s32 %v395_v50, %v393_v49 }
  0x2c   : > { %v202_v54 = vsel %vm200_vm5, %v201_v53, %v396_v51 }
  0x2d   : > { %v203_v55 = vadd.s32 %v202_v54, %v198_v52 }
  0x2f   : > { %v204_v56 = vadd.s32 536870912, %v203_v55 }
  0x31   : > { %v205_v57 = vshrl.u32 %v204_v56, 30 }
  0x33   : > { %v206_v58 = vshll.u32 %v205_v57, 30  ;;  %v229_v15 = vsub.s32 4, %v205_v57 }
  0x35   : > { %v207_v59 = vsub.s32 %v203_v55, %v206_v58  ;;  %v230_v18 = vsel %vm145_vm7, %v229_v15, %v205_v57 }
  0x36   : > { %v232_v20 = vsel %vm144_vm8, 0, %v230_v18 }
  0x37   : > { %v209_v60 = vsub.s32 0, %v207_v59  ;;  %v236_v21 = vadd.s32 3, %v232_v20 }
  0x39   : > { %v311_v61 = vmin.u32 %v209_v60, %v207_v59  ;;  %v237_v22 = vand.u32 3, %v236_v21 }
  0x3b   : > { %v211_v62 = vclz %v311_v61  ;;  %vm242_vm9 = vcmp.eq.s32.totalorder %v237_v22, 2  ;;  %vm239_vm10 = vcmp.eq.s32.totalorder %v237_v22, 0  ;;  %vm238_vm11 = vcmp.lt.s32.totalorder %v237_v22, 2 }
  0x3d   : > { %v312_v63 = vadd.s32 4294967294, %v211_v62 }
  0x3f   : > { %vm313_vm6 = vcmp.lt.s32.totalorder %v312_v63, 0 }
  0x40   : > { %v214_v2 = vsel %vm313_vm6, 0, %v312_v63 }
  0x41   : > { %v215_v3 = vsub.s32 32, %v214_v2  ;;  %v216_v5 = vshll.u32 %v207_v59, %v214_v2  ;;  %v219_v6 = vsub.s32 4294967266, %v214_v2 }
  0x43   : > { %v217_v7 = vshrl.u32 %v199_v0, %v215_v3  ;;  %v220_v8 = vadd.s32 127, %v219_v6 }
  0x45   : > { %v218_v9 = vor.u32 %v217_v7, %v216_v5  ;;  %v221_v10 = vshll.u32 %v220_v8, 23 }
  0x47   : > { %v222_v11 = vor.u32 4788187, %v221_v10  ;;  %v225_v12 = vcvt.s32.f32 %v218_v9 }
  0x49   : > { %v223_v13 = vand.u32 2147483647, %v222_v11 }
  0x4b   : > { %v226_v14 = vmul.f32 %v225_v12, %v223_v13 }
  0x4d   : > { %v227_v16 = vxor.u32 2147483648, %v226_v14 }
  0x4f   : > { %v228_v17 = vsel %vm145_vm7, %v227_v16, %v226_v14 }
  0x50   : > { %v231_v19 = vsel %vm144_vm8, %v386_v1, %v228_v17 }
  0x51   : > { %334 = vcosq.f32 %v231_v19 }
  0x52   : > { %336 = vsinq.f32 %v231_v19 }
  0x5e   : > { %v335_v23 = vpop.eup %334 }
  0x5f   : > { %v337_v24 = vpop.eup %336  ;;  %v243_v25 = vxor.u32 2147483648, %v335_v23 }
  0x60   : > { %v240_v26 = vxor.u32 2147483648, %v337_v24 }
  0x61   : > { %v244_v4 = vsel %vm242_vm9, %v243_v25, %v337_v24 }
  0x62   : > { %v241_v27 = vsel %vm239_vm10, %v335_v23, %v240_v26 }
  0x63   : > { %v245_v29 = vsel %vm238_vm11, %v241_v27, %v244_v4 }
  0x64   : > { %v246_v30 = vsel %vm235_vm12, nan, %v245_v29 }
  0x65   : > { %v248_v31 = vmul.f32 %v247_v28, %v246_v30 }
  0x67   : > { %249 = vst [vmem:[%s139_s19] sm:$0xff] %v248_v31 }
  0x68 PF: > { %s13_s11 = sadd.s32 1, %s344_s11  }
  0x69   : > { %p10_p4 = scmp.ge.s32.totalorder %s13_s11, 4  }
  0x6b   :  { %12 = sbr.rel (!%p10_p4) target bundleno = 2 (0x2), region = 58 }

</bundles_post_ra>
